<compile_context>
chip_gen: v6e
topology: v6e:2x2x1
jax: 0.10.0
libtpu: 0.0.40
codegen_flags: <defaults>
</compile_context>

<pallas_src>
import jax
import jax.numpy as jnp
from jax.experimental import pallas as pl
from jax.experimental.pallas import tpu as pltpu


def concat_dup_kernel(x1_ref, x2_ref, x3_ref, o_ref):
    # Refs are lane-dense (C, H*W) views for the current batch element.
    c1 = x1_ref.shape[0]
    c2 = x2_ref.shape[0]
    c3 = x3_ref.shape[0]
    ctot = c1 + c2 + c3
    # Load each input once, store twice (t4 = [t1, t1]).
    v1 = x1_ref[...]
    v2 = x2_ref[...]
    v3 = x3_ref[...]
    o_ref[0:c1] = v1
    o_ref[c1:c1 + c2] = v2
    o_ref[c1 + c2:ctot] = v3
    o_ref[ctot:ctot + c1] = v1
    o_ref[ctot + c1:ctot + c1 + c2] = v2
    o_ref[ctot + c1 + c2:2 * ctot] = v3


def model_forward(x1, x2, x3):
    B, C1, H, W = x1.shape
    C2 = x2.shape[1]
    C3 = x3.shape[1]
    Ctot = C1 + C2 + C3
    Cout = 2 * Ctot
    HW = H * W

    # Free row-major reshape to a lane-dense layout: last dim = H*W.
    x1f = x1.reshape(B, C1, HW)
    x2f = x2.reshape(B, C2, HW)
    x3f = x3.reshape(B, C3, HW)

    def in_spec(c):
        # Squeeze the batch dim so the kernel sees (C, H*W).
        return pl.BlockSpec((pl.Squeezed(), c, HW), lambda b: (b, 0, 0))

    out_spec = pl.BlockSpec((pl.Squeezed(), Cout, HW), lambda b: (b, 0, 0))

    out_flat = pl.pallas_call(
        concat_dup_kernel,
        out_shape=jax.ShapeDtypeStruct((B, Cout, HW), x1.dtype),
        grid_spec=pltpu.PrefetchScalarGridSpec(
            num_scalar_prefetch=0,
            grid=(B,),
            in_specs=[in_spec(C1), in_spec(C2), in_spec(C3)],
            out_specs=out_spec,
        ),
        compiler_params=pltpu.CompilerParams(
            dimension_semantics=("parallel",),
        ),
    )(x1f, x2f, x3f)

    # Free reshape back to NCHW.
    return out_flat.reshape(B, Cout, H, W)


if __name__ == "__main__":
    key = jax.random.PRNGKey(0)
    k1, k2, k3 = jax.random.split(key, 3)
    # Small shapes consistent with the module's channel structure (4, 4, 1).
    B, H, W = 2, 16, 16
    x1 = jax.random.normal(k1, (B, 4, H, W), dtype=jnp.float32)
    x2 = jax.random.normal(k2, (B, 4, H, W), dtype=jnp.float32)
    x3 = jax.random.normal(k3, (B, 1, H, W), dtype=jnp.float32)

    out = model_forward(x1, x2, x3)
    out = jax.block_until_ready(out)

    # Reference check in plain JAX.
    t1 = jnp.concatenate([x1, x2, x3], axis=1)
    ref = jnp.concatenate([t1, t1], axis=1)
    assert out.shape == (B, 18, H, W), out.shape
    assert jnp.array_equal(out, ref)

    print("KERNEL_OK")
</pallas_src>

<mosaic_0001>
module attributes {stable_mosaic.version = 11 : i64} {
  func.func @concat_dup_kernel(%arg0: i32, %arg1: memref<1x4x256xf32, #tpu.memory_space<vmem>>, %arg2: memref<1x4x256xf32, #tpu.memory_space<vmem>>, %arg3: memref<1x1x256xf32, #tpu.memory_space<vmem>>, %arg4: memref<1x18x256xf32, #tpu.memory_space<vmem>>) attributes {dimension_semantics = [#tpu.dimension_semantics<parallel>], iteration_bounds = array<i64: 2>, scalar_prefetch = 0 : i64, scratch_operands = 0 : i64, tpu.core_type = #tpu.core_type<tc>, window_params = [{transform_indices = @transform_0, window_bounds = array<i64: 1, 4, 256>}, {transform_indices = @transform_1, window_bounds = array<i64: 1, 4, 256>}, {transform_indices = @transform_2, window_bounds = array<i64: 1, 1, 256>}, {transform_indices = @transform_3, window_bounds = array<i64: 1, 18, 256>}]} {
    %c0 = arith.constant 0 : index
    %c0_0 = arith.constant 0 : index
    %c0_1 = arith.constant 0 : index
    %0 = vector.load %arg1[%c0, %c0_0, %c0_1] : memref<1x4x256xf32, #tpu.memory_space<vmem>>, vector<1x4x256xf32>
    %1 = vector.shape_cast %0 : vector<1x4x256xf32> to vector<4x256xf32>
    %c0_2 = arith.constant 0 : index
    %c0_3 = arith.constant 0 : index
    %c0_4 = arith.constant 0 : index
    %2 = vector.load %arg2[%c0_2, %c0_3, %c0_4] : memref<1x4x256xf32, #tpu.memory_space<vmem>>, vector<1x4x256xf32>
    %3 = vector.shape_cast %2 : vector<1x4x256xf32> to vector<4x256xf32>
    %c0_5 = arith.constant 0 : index
    %c0_6 = arith.constant 0 : index
    %c0_7 = arith.constant 0 : index
    %4 = vector.load %arg3[%c0_5, %c0_6, %c0_7] : memref<1x1x256xf32, #tpu.memory_space<vmem>>, vector<1x1x256xf32>
    %5 = vector.shape_cast %4 : vector<1x1x256xf32> to vector<1x256xf32>
    %c0_8 = arith.constant 0 : index
    %c0_9 = arith.constant 0 : index
    %c0_10 = arith.constant 0 : index
    %6 = vector.load %arg4[%c0_8, %c0_9, %c0_10] : memref<1x18x256xf32, #tpu.memory_space<vmem>>, vector<1x4x256xf32>
    %7 = vector.shape_cast %6 : vector<1x4x256xf32> to vector<4x256xf32>
    %8 = vector.shape_cast %1 : vector<4x256xf32> to vector<1x4x256xf32>
    tpu.vector_store %arg4[%c0_8, %c0_9, %c0_10], %8 {strides = array<i32>} : memref<1x18x256xf32, #tpu.memory_space<vmem>>, vector<1x4x256xf32>,
    %c0_11 = arith.constant 0 : index
    %c4 = arith.constant 4 : index
    %c0_12 = arith.constant 0 : index
    %9 = vector.load %arg4[%c0_11, %c4, %c0_12] : memref<1x18x256xf32, #tpu.memory_space<vmem>>, vector<1x4x256xf32>
    %10 = vector.shape_cast %9 : vector<1x4x256xf32> to vector<4x256xf32>
    %11 = vector.shape_cast %3 : vector<4x256xf32> to vector<1x4x256xf32>
    tpu.vector_store %arg4[%c0_11, %c4, %c0_12], %11 {strides = array<i32>} : memref<1x18x256xf32, #tpu.memory_space<vmem>>, vector<1x4x256xf32>,
    %c0_13 = arith.constant 0 : index
    %c8 = arith.constant 8 : index
    %c0_14 = arith.constant 0 : index
    %12 = vector.load %arg4[%c0_13, %c8, %c0_14] : memref<1x18x256xf32, #tpu.memory_space<vmem>>, vector<1x1x256xf32>
    %13 = vector.shape_cast %12 : vector<1x1x256xf32> to vector<1x256xf32>
    %14 = vector.shape_cast %5 : vector<1x256xf32> to vector<1x1x256xf32>
    tpu.vector_store %arg4[%c0_13, %c8, %c0_14], %14 {strides = array<i32>} : memref<1x18x256xf32, #tpu.memory_space<vmem>>, vector<1x1x256xf32>,
    %c0_15 = arith.constant 0 : index
    %c9 = arith.constant 9 : index
    %c0_16 = arith.constant 0 : index
    %15 = vector.load %arg4[%c0_15, %c9, %c0_16] : memref<1x18x256xf32, #tpu.memory_space<vmem>>, vector<1x4x256xf32>
    %16 = vector.shape_cast %15 : vector<1x4x256xf32> to vector<4x256xf32>
    %17 = vector.shape_cast %1 : vector<4x256xf32> to vector<1x4x256xf32>
    tpu.vector_store %arg4[%c0_15, %c9, %c0_16], %17 {strides = array<i32>} : memref<1x18x256xf32, #tpu.memory_space<vmem>>, vector<1x4x256xf32>,
    %c0_17 = arith.constant 0 : index
    %c13 = arith.constant 13 : index
    %c0_18 = arith.constant 0 : index
    %18 = vector.load %arg4[%c0_17, %c13, %c0_18] : memref<1x18x256xf32, #tpu.memory_space<vmem>>, vector<1x4x256xf32>
    %19 = vector.shape_cast %18 : vector<1x4x256xf32> to vector<4x256xf32>
    %20 = vector.shape_cast %3 : vector<4x256xf32> to vector<1x4x256xf32>
    tpu.vector_store %arg4[%c0_17, %c13, %c0_18], %20 {strides = array<i32>} : memref<1x18x256xf32, #tpu.memory_space<vmem>>, vector<1x4x256xf32>,
    %c0_19 = arith.constant 0 : index
    %c17 = arith.constant 17 : index
    %c0_20 = arith.constant 0 : index
    %21 = vector.load %arg4[%c0_19, %c17, %c0_20] : memref<1x18x256xf32, #tpu.memory_space<vmem>>, vector<1x1x256xf32>
    %22 = vector.shape_cast %21 : vector<1x1x256xf32> to vector<1x256xf32>
    %23 = vector.shape_cast %5 : vector<1x256xf32> to vector<1x1x256xf32>
    tpu.vector_store %arg4[%c0_19, %c17, %c0_20], %23 {strides = array<i32>} : memref<1x18x256xf32, #tpu.memory_space<vmem>>, vector<1x1x256xf32>,
    return
  }
  func.func @transform_0(%arg0: i32) -> (i32, i32, i32) {
    %c0_i32 = arith.constant 0 : i32
    %c0_i32_0 = arith.constant 0 : i32
    %c0_i32_1 = arith.constant 0 : i32
    return %arg0, %c0_i32, %c0_i32_0 : i32, i32, i32
  }
  func.func @transform_1(%arg0: i32) -> (i32, i32, i32) {
    %c0_i32 = arith.constant 0 : i32
    %c0_i32_0 = arith.constant 0 : i32
    %c0_i32_1 = arith.constant 0 : i32
    return %arg0, %c0_i32, %c0_i32_0 : i32, i32, i32
  }
  func.func @transform_2(%arg0: i32) -> (i32, i32, i32) {
    %c0_i32 = arith.constant 0 : i32
    %c0_i32_0 = arith.constant 0 : i32
    %c0_i32_1 = arith.constant 0 : i32
    return %arg0, %c0_i32, %c0_i32_0 : i32, i32, i32
  }
  func.func @transform_3(%arg0: i32) -> (i32, i32, i32) {
    %c0_i32 = arith.constant 0 : i32
    %c0_i32_0 = arith.constant 0 : i32
    %c0_i32_1 = arith.constant 0 : i32
    return %arg0, %c0_i32, %c0_i32_0 : i32, i32, i32
  }
}

</mosaic_0001>

<bundles_post_ra>
// kernel: tpu_custom_call.1
= control target key start
LH: loop header
LB: loop body
LE: loop exit
PB: predicated region body
PF: predicated region fallthrough
CT: control target
= control target key end

     0   :  { %8 = vsyncpa [#allocation3], 0  ;;  %s801_s0 = inlined_call_operand.hbm [shape: f32[2,4,256], index: 0, kind: input, shape index: {}]   ;;  %s802_s1 = inlined_call_operand.hbm [shape: f32[2,4,256], index: 1, kind: input, shape index: {}]   ;;  %s803_s2 = inlined_call_operand.hbm [shape: f32[2,1,256], index: 2, kind: input, shape index: {}]   ;;  %s804_s3 = inlined_call_operand.vmem [shape: f32[2,18,256], index: 3, kind: output, shape index: {}]  }
   0x1   :  { %10 = vsyncpa [#allocation3 + $0x1], 0 }
   0x2   :  { %11 = vsyncpa [#allocation5], 0 }
   0x3   :  { %13 = vsyncpa [#allocation5 + $0x1], 0  ;;  %s633_s12 = smov 0   ;;  %s635_s13 = smov 0  }
   0x4   :  { %s637_s14 = smov 0   ;;  %s639_s15 = smov 0  }
   0x5 LB: > { %s652_s16 = sadd.s32 4294967295, %s608_s15   ;;  %s655_s17 = sadd.s32 1, %s608_s15   ;;  %s608_s15 = sphi %s639_s15, %s817_s15   ;;  %s604_s14 = sphi %s637_s14, %s816_s14   ;;  %s600_s13 = sphi %s635_s13, %s815_s13   ;;  %s596_s12 = sphi %s633_s12, %s814_s12  }
   0x6   : > { %s23_s18 = ssub.s32 %s608_s15, %s655_s17  ;;  %s26_s19 = sadd.s32 1, %s604_s14 }
   0x7   : > { %p24_p0 = scmp.eq.s32.totalorder %s23_s18, 0  ;;  %p33_p1 = scmp.ne.s32.totalorder %s604_s14, %s600_s13 }
   0x8   : > { %p34_p2 = scmp.eq.s32.totalorder %s608_s15, 0  ;;  %p39_p3 = scmp.ne.s32.totalorder %s600_s13, %s596_s12 }
   0x9   : > { %s665_s20 = scalar_select %p24_p0, %s604_s14, %s26_s19  }
   0xa   : > { %p35_p4 = por %p34_p2, %p33_p1  ;;  %p40_p5 = scmp.eq.s32.totalorder %s652_s16, 0 }
   0xb   : > { %p451_p6 = scmp.lt.s32.totalorder %s608_s15, 2  ;;  %s674_s22 = sand.u32 1, %s604_s14  }
   0xc   : > { %p669_p7 = por %p40_p5, %p39_p3  ;;  %s413_s23 = sshll.u32 %s674_s22, 3 }
   0xd   : > { %s431_s24 = sshll.u32 %s608_s15, 7  ;;  %p678_p8 = pnand %p451_p6, %p35_p4 }
   0xe   : > { %s806_s21 = scalar_select %p669_p7, 1, 0 }
   0xf   : > { %s160_s26 = sand.u32 1, %s608_s15   ;;  %s688_s29 = scalar_lea.hbm %s802_s1, %s431_s24 }
  0x10   : > { %s164_s30 = scalar_lea.vmem [#allocation4], %s413_s23  ;;  %s694_s5 = scalar_lea.sflag [#allocation5], %s160_s26 }
  0x11   : > { %s172_s4 = sshll.u32 %s164_s30, 4  ;;  %s486_s6 = scalar_lea.hbm %s688_s29, 128  ;;  %s173_s4 = int_to_ptr.vmem [resolvable:$true] %s172_s4 }
  0x12   : > { %p487_p11 = scmp.ne.s32.totalorder %s688_s29, %s486_s6  ;;  %p700_p12 = pneg %p678_p8 }
  0x13   : > { %s491_s10 = scalar_lea.hbm %s802_s1, 256  ;;  %p492_p1 = scmp.lt.s32.totalorder %s688_s29, %s802_s1 }
  0x14   : > { %p489_p13 = pnand %p700_p12, %p487_p11  ;;  %p493_p2 = scmp.lt.s32.totalorder %s491_s10, %s486_s6 }
  0x16   : > { %p490_p0 = pneg %p489_p13  ;;  %p494_p3 = por %p493_p2, %p492_p1 }
  0x18   : > { %p495_p4 = pnand %p494_p3, %p490_p0 }
  0x1a   : > { %498 = shalt.err (!%p495_p4)
}
  0x1b   : > { %s499_s18 = scalar_lea.vmem %s173_s4, 128  ;;  %s610_s19 = smov [#allocation4]  }
  0x1c   : > { %p500_p5 = scmp.ne.s32.totalorder %s173_s4, %s499_s18  ;;  %s504_s26 = sshll.u32 %s610_s19, 4  ;;  %s505_s26 = int_to_ptr.vmem [resolvable:$false] %s504_s26 }
  0x1d   : > { %s506_s27 = scalar_lea.vmem %s505_s26, 256  ;;  %p507_p11 = scmp.lt.s32.totalorder %s173_s4, %s505_s26 }
  0x1e   : > { %p502_p6 = pnand %p500_p5, %p700_p12  ;;  %p508_p13 = scmp.lt.s32.totalorder %s506_s27, %s499_s18 }
  0x20   : > { %p503_p9 = pneg %p502_p6  ;;  %p509_p10 = por %p508_p13, %p507_p11 }
  0x22   : > { %p510_p7 = pnand %p509_p10, %p503_p9 }
  0x24   : > { %513 = shalt.err (!%p510_p7)
}
  0x25   : > { %447 = dma.hbm_to_vmem [thread:$0]  (!%p678_p8), %s688_s29, 128, %s173_s4, %s694_s5  }
  0x26   : > { %p809_p0 = scmp.lt.s32.totalorder %s608_s15, 3  ;;  %p810_p1 = scmp.ge.s32.totalorder %s608_s15, 1 }
  0x27   : > { %s732_s8 = scalar_lea.hbm %s801_s0, %s431_s24  ;;  %s145_s9 = scalar_lea.vmem [#allocation2], %s413_s23 }
  0x28   : > { %p723_p2 = pnand %p810_p1, %p809_p0  ;;  %s153_s10 = sshll.u32 %s145_s9, 4  ;;  %s154_s10 = int_to_ptr.vmem [resolvable:$true] %s153_s10 }
  0x29   : > { %s419_s11 = sshll.u32 %s674_s22, 1  ;;  %s142_s29 = scalar_lea.sflag [#allocation3], %s674_s22 }
  0x2a   : > { %s811_s28 = scalar_select %p723_p2, 1, 0 }
  0x2b   : > { %s514_s4 = scalar_lea.hbm %s732_s8, 128  ;;  %s519_s19 = scalar_lea.hbm %s801_s0, 256 }
  0x2c   : > { %p515_p7 = scmp.ne.s32.totalorder %s732_s8, %s514_s4  ;;  %p520_p3 = scmp.lt.s32.totalorder %s732_s8, %s801_s0 }
  0x2d   : > { %p521_p4 = scmp.lt.s32.totalorder %s519_s19, %s514_s4 }
  0x2e   : > { %p517_p9 = pnand %p515_p7, %p700_p12 }
  0x2f   : > { %p522_p5 = por %p521_p4, %p520_p3 }
  0x30   : > { %p518_p10 = pneg %p517_p9 }
  0x32   : > { %p523_p6 = pnand %p522_p5, %p518_p10 }
  0x34   : > { %526 = shalt.err (!%p523_p6)
}
  0x35   : > { %s527_s23 = scalar_lea.vmem %s154_s10, 128  ;;  %s611_s22 = smov [#allocation2]  }
  0x36   : > { %p528_p11 = scmp.ne.s32.totalorder %s154_s10, %s527_s23  ;;  %s532_s27 = sshll.u32 %s611_s22, 4  ;;  %s533_s27 = int_to_ptr.vmem [resolvable:$false] %s532_s27 }
  0x37   : > { %s534_s30 = scalar_lea.vmem %s533_s27, 256  ;;  %p535_p1 = scmp.lt.s32.totalorder %s154_s10, %s533_s27 }
  0x38   : > { %p530_p13 = pnand %p528_p11, %p700_p12  ;;  %p536_p7 = scmp.lt.s32.totalorder %s534_s30, %s527_s23 }
  0x3a   : > { %p531_p0 = pneg %p530_p13  ;;  %p537_p9 = por %p536_p7, %p535_p1 }
  0x3c   : > { %p538_p2 = pnand %p537_p9, %p531_p0 }
  0x3e   : > { %541 = shalt.err (!%p538_p2)
}
  0x3f   : > { %444 = dma.hbm_to_vmem [thread:$0]  (!%p678_p8), %s732_s8, 128, %s154_s10, %s142_s29  }
  0x40   : > { %s433_s6 = sshll.u32 %s608_s15, 5  ;;  %s183_s9 = scalar_lea.vmem [#allocation6], %s419_s11 }
  0x41   : > { %s191_s4 = sshll.u32 %s183_s9, 4  ;;  %s189_s19 = scalar_lea.hbm %s803_s2, %s433_s6  ;;  %s192_s4 = int_to_ptr.vmem [resolvable:$true] %s191_s4 }
  0x42   : > { %s542_s24 = scalar_lea.hbm %s189_s19, 32  ;;  %s547_s22 = scalar_lea.hbm %s803_s2, 64 }
  0x43   : > { %p543_p10 = scmp.ne.s32.totalorder %s189_s19, %s542_s24  ;;  %p548_p2 = scmp.lt.s32.totalorder %s189_s19, %s803_s2 }
  0x44   : > { %p549_p5 = scmp.lt.s32.totalorder %s547_s22, %s542_s24 }
  0x45   : > { %p545_p3 = pnand %p543_p10, %p700_p12 }
  0x46   : > { %p550_p6 = por %p549_p5, %p548_p2 }
  0x47   : > { %p546_p4 = pneg %p545_p3 }
  0x49   : > { %p551_p11 = pnand %p550_p6, %p546_p4 }
  0x4b   : > { %554 = shalt.err (!%p551_p11)
}
  0x4c   : > { %s555_s15 = scalar_lea.vmem %s192_s4, 32  ;;  %s612_s8 = smov [#allocation6]  }
  0x4d   : > { %p556_p13 = scmp.ne.s32.totalorder %s192_s4, %s555_s15  ;;  %s560_s10 = sshll.u32 %s612_s8, 4  ;;  %s561_s10 = int_to_ptr.vmem [resolvable:$false] %s560_s10 }
  0x4e   : > { %s562_s11 = scalar_lea.vmem %s561_s10, 64  ;;  %p563_p7 = scmp.lt.s32.totalorder %s192_s4, %s561_s10 }
  0x4f   : > { %p558_p0 = pnand %p556_p13, %p700_p12  ;;  %p564_p9 = scmp.lt.s32.totalorder %s562_s11, %s555_s15 }
  0x51   : > { %p559_p1 = pneg %p558_p0  ;;  %p565_p10 = por %p564_p9, %p563_p7 }
  0x53   : > { %p566_p3 = pnand %p565_p10, %p559_p1 }
  0x55   : > { %569 = shalt.err (!%p566_p3)
}
  0x56   : > { %450 = dma.hbm_to_vmem [thread:$0]  (!%p678_p8), %s189_s19, 32, %s192_s4, %s694_s5  }
  0x57   : > { %p812_p4 = scmp.ne.s32.totalorder %s811_s28, 0 }
  0x58   : > { %s202_s7 = sand.u32 (!%p812_p4), 1, %s600_s13   ;;  %p813_p12 = scmp.ne.s32.totalorder (!%p812_p4), %s806_s21, 0 }
  0x59   : > { %200 = sbr.rel (%p812_p4) target bundleno = 109 (0x6d), region = 32  ;;  %s423_s29 = sshll.u32 (!%p812_p4), %s202_s7, 3 }
  0x5a   : > { %s203_s6 = scalar_lea.sflag (!%p812_p4), [#allocation3], %s202_s7  ;;  %s206_s9 = scalar_lea.vmem (!%p812_p4), [#allocation2], %s423_s29 }
  0x5e   : > { %587 = dma.done.wait (%p813_p12), %s203_s6, 128  }
  0x5f   : > { %589 = vsyncadd (%p813_p12), %s203_s6, 4294967168  ;;  %s211_s12 = sand.u32 1, %s652_s16   ;;  %s215_s18 = scalar_lea.vmem [#allocation4], %s423_s29 }
  0x60   : > { %s212_s25 = scalar_lea.sflag [#allocation5], %s211_s12 }
  0x61   : > { %591 = dma.done.wait (%p813_p12), %s212_s25, 160  }
  0x62   : > { %593 = vsyncadd (%p813_p12), %s212_s25, 4294967136  ;;  %p257_p8 = scmp.lt.s32.totalorder %s652_s16, 1  ;;  %s425_s5 = sshll.u32 %s202_s7, 1  ;;  %v275_v0 = vlaneseq  ;;  %v262_v1 = vld [vmem:[%s206_s9] sm:$0xff]  ;;  %v263_v2 = vld [vmem:[%s215_s18] sm:$0xff] }
  0x63   : > { %s224_s26 = scalar_lea.vmem [#allocation6], %s425_s5  ;;  %v266_v4 = vcombine.high %v262_v1, %v262_v1  ;;  %v271_v5 = vcombine.low %v263_v2, %v263_v2  ;;  %v282_v6 = vrot.slane %v262_v1, 7  ;;  %v289_v7 = vrot.slane %v263_v2, 3 }
  0x64   : > { %s819_s16 = smov (!%p257_p8, %s652_s16), 1  ;;  %vm277_vm0 = vcmp.lt.s32.totalorder %v275_v0, 256  ;;  %v264_v3 = vld [vmem:[%s224_s26] sm:$0x3]  ;;  %v288_v8 = vcombine.high %v263_v2, %v263_v2 }
  0x65   : > { %s434_s28 = smul.u32 48, %s819_s16  ;;  %v283_v9 = vrot.slane %v266_v4, 7 }
  0x66   : > { %v290_v10 = vrot.slane %v288_v8, 3 }
  0x67   : > { %s261_s24 = scalar_lea.vmem %s804_s3, %s434_s28 }
  0x68   : > { %268 = vst [vmem:[%s261_s24] sm:$0xf] %v262_v1  ;;  %274 = vst [vmem:[%s261_s24 + $0x8] sm:$0xf0] %v263_v2 }
  0x69   : > { %427 = vst.msk [vmem:[%s261_s24 + $0x10] ss:$8 sm:$0x3] %vm277_vm0, %v264_v3  ;;  %428 = vst.msk [vmem:[%s261_s24 + $0x21] ss:$8 sm:$0x3] %vm277_vm0, %v264_v3 }
  0x6a   : > { %269 = vst [vmem:[%s261_s24 + $0x8] sm:$0xf] %v266_v4  ;;  %273 = vst [vmem:[%s261_s24] sm:$0xf0] %v271_v5 }
  0x6b   : > { %286 = vst [vmem:[%s261_s24 + $0x10] sm:$0x1e] %v282_v6  ;;  %293 = vst [vmem:[%s261_s24 + $0x20] ss:$-12 sps:$4 sm:$0xe1] %v289_v7  }
  0x6c   : > { %287 = vst [vmem:[%s261_s24 + $0x18] sm:$0x1e] %v283_v9  ;;  %294 = vst [vmem:[%s261_s24 + $0x28] ss:$-12 sps:$4 sm:$0xe1] %v290_v10  }
  0x6d PF: > { %p16_p2 = scmp.ge.s32.totalorder %s655_s17, 4   ;;  %s814_s12 = smov %s600_s13 }
  0x6e   : > { %s815_s13 = smov %s604_s14  ;;  %s816_s14 = smov %s665_s20 }
  0x6f   : > { %s817_s15 = smov %s655_s17  ;;  %18 = sbr.rel (!%p16_p2) target bundleno = 5 (0x5), region = 98 }
  0x74   :  { %321 = vsyncpa [#allocation3], 1 }
  0x75   :  { %323 = vsyncpa [#allocation3 + $0x1], 1 }
  0x76   :  { %324 = vsyncpa [#allocation5], 1 }
  0x77   :  { %326 = vsyncpa [#allocation5 + $0x1], 1 }

</bundles_post_ra>
